<compile_context>
chip_gen: v7x
topology: tpu7x:2x2x1
jax: 0.10.0
libtpu: 0.0.40
codegen_flags: <defaults>
</compile_context>

<pallas_src>
import functools
import math

import jax
import jax.numpy as jnp
from jax import lax
from jax.experimental import pallas as pl
from jax.experimental.pallas import tpu as pltpu


# ---------------------------------------------------------------------------
# Tiling helper
# ---------------------------------------------------------------------------
def _pick_tile(n, target, row_unit=1):
    """Largest divisor d of n with d <= target whose row count d*row_unit is a
    multiple of 8 (sublane tiling); falls back to the full extent n."""
    best = None
    for d in range(1, n + 1):
        if n % d != 0 or d > target:
            continue
        if (d * row_unit) % 8 == 0:
            best = d
    return best if best is not None else n


# ---------------------------------------------------------------------------
# Kernel A1: sequence reduction (sr-conv as sr MXU matmuls) + LayerNorm + K/V
# ---------------------------------------------------------------------------
def _kv_sr_kernel(x_ref, wsr_ref, bsr_ref, gamma_ref, beta_ref,
                  wk_ref, bk_ref, wv_ref, bv_ref,
                  k_ref, v_ref, *, sr, ln_eps):
    # x_ref block: (1, th, sr, Wo, sr*C) — a metadata-only reshape of x; the
    # lane axis is (kx, c) merged, so each ky gives one (rows, sr*C) matmul.
    _, th, _, wo, src = x_ref.shape
    c = wk_ref.shape[0]
    rows = th * wo

    acc = jnp.zeros((rows, c), jnp.float32)
    for ky in range(sr):                                   # static unroll, sr <= 8
        slab = x_ref[0, :, ky, :, :].reshape(rows, src)    # model dtype -> MXU
        acc = acc + jnp.dot(slab, wsr_ref[ky],
                            preferred_element_type=jnp.float32)
    red = acc + bsr_ref[...]                               # (rows, C) f32

    # LayerNorm over channels (f32 math, biased variance, eps inside sqrt).
    mean = jnp.mean(red, axis=-1, keepdims=True)
    cent = red - mean
    var = jnp.mean(cent * cent, axis=-1, keepdims=True)
    red = cent * lax.rsqrt(var + ln_eps)
    red = (red * gamma_ref[...] + beta_ref[...]).astype(x_ref.dtype)

    # K/V projections (model-dtype MXU operands, f32 accumulation).
    k = jnp.dot(red, wk_ref[...], preferred_element_type=jnp.float32) + bk_ref[...]
    v = jnp.dot(red, wv_ref[...], preferred_element_type=jnp.float32) + bv_ref[...]
    k_ref[0] = k.astype(k_ref.dtype)
    v_ref[0] = v.astype(v_ref.dtype)


# ---------------------------------------------------------------------------
# Kernel A2: K/V projections without sequence reduction (sr_ratio == 1)
# ---------------------------------------------------------------------------
def _kv_plain_kernel(x_ref, wk_ref, bk_ref, wv_ref, bv_ref, k_ref, v_ref):
    x = x_ref[0]                                           # model dtype
    k = jnp.dot(x, wk_ref[...], preferred_element_type=jnp.float32) + bk_ref[...]
    v = jnp.dot(x, wv_ref[...], preferred_element_type=jnp.float32) + bv_ref[...]
    k_ref[0] = k.astype(k_ref.dtype)
    v_ref[0] = v.astype(v_ref.dtype)


# ---------------------------------------------------------------------------
# Kernel B: Q projection + per-head softmax attention for one query stripe
# ---------------------------------------------------------------------------
def _attention_kernel(x_ref, wq_ref, bq_ref, k_ref, v_ref, o_ref, ctx_ref, *,
                      num_heads, head_dim):
    x = x_ref[0]                                           # (tq, C) model dtype
    # Query projection; 1/sqrt(head_dim) is folded into wq/bq at prep time.
    q = (jnp.dot(x, wq_ref[...], preferred_element_type=jnp.float32)
         + bq_ref[...]).astype(x.dtype)                    # back to model dtype for MXU
    k = k_ref[0]                                           # (Lr, C) model dtype
    v = v_ref[0]                                           # (Lr, C) model dtype

    # TODO(synk): a head-batched dot_general could interleave MXU pushes across
    # heads (dh=32 underfills the MXU); kept unrolled pending a bundle check.
    dims = (((1,), (1,)), ((), ()))                        # q_h @ k_h^T
    for h in range(num_heads):                             # static unroll
        sl = slice(h * head_dim, (h + 1) * head_dim)
        s = lax.dot_general(q[:, sl], k[:, sl], dims,
                            preferred_element_type=jnp.float32)   # (tq, Lr) f32
        s = s - jnp.max(s, axis=-1, keepdims=True)
        e = jnp.exp(s)
        inv = pl.reciprocal(jnp.sum(e, axis=-1, keepdims=True), approx=True)
        p = (e * inv).astype(v.dtype)
        # Retire each head into VMEM scratch so per-head (tq, Lr) tiles don't
        # all stay live; the final store is one dense lane-wide (tq, C) write.
        ctx_ref[:, sl] = jnp.dot(p, v[:, sl], preferred_element_type=jnp.float32)

    o_ref[0] = ctx_ref[...].astype(o_ref.dtype)


# ---------------------------------------------------------------------------
# Wrapper
# ---------------------------------------------------------------------------
def segformer_efficient_self_attention(hidden_states, height, width, params,
                                       num_heads, sr_ratio, ln_eps=1e-5):
    """Pallas implementation of SegformerEfficientSelfAttention.forward.

    hidden_states: (B, L, C) with L == height * width
    params (torch layout):
      wq/wk/wv: (C, C) (out, in);  bq/bk/bv: (C,)
      w_sr: (C, C, sr, sr);  b_sr: (C,);  gamma/beta: (C,)   (only if sr_ratio > 1)
    Returns: context_layer (B, L, C) in hidden_states.dtype
    """
    B, L, C = hidden_states.shape
    assert L == height * width
    assert C % num_heads == 0
    head_dim = C // num_heads
    dtype = hidden_states.dtype
    f32 = jnp.float32

    # ------------- one-time parameter transforms (no per-call activation work)
    scale = 1.0 / math.sqrt(head_dim)
    wq_t = (jnp.asarray(params["wq"], f32).T * scale).astype(dtype)   # scale folded in
    bq = (jnp.asarray(params["bq"], f32) * scale).reshape(1, C)
    wk_t = jnp.asarray(params["wk"], f32).T.astype(dtype)
    wv_t = jnp.asarray(params["wv"], f32).T.astype(dtype)
    bk = jnp.asarray(params["bk"], f32).reshape(1, C)
    bv = jnp.asarray(params["bv"], f32).reshape(1, C)

    def full(shape):
        return pl.BlockSpec(shape, lambda *_: (0,) * len(shape))

    # ------------- K/V producer, tiled over (batch, reduced-row stripes) ------
    if sr_ratio > 1:
        sr = int(sr_ratio)
        assert height % sr == 0 and width % sr == 0, (
            "TODO(synk): torch conv silently truncates non-divisible edges")
        Ho, Wo = height // sr, width // sr
        Lr = Ho * Wo
        src = sr * C

        # Metadata-only reshape (no HBM pass): token (oy*sr+ky)*W + ox*sr+kx,
        # channel c  ->  x_kv[b, oy, ky, ox, kx*C + c].
        x_kv = hidden_states.reshape(B, Ho, sr, Wo, src)
        # Conv weight (Cout, Cin, ky, kx) -> per-ky (kx*Cin, Cout) matrices.
        w_sr_k = (jnp.transpose(jnp.asarray(params["w_sr"], f32), (2, 3, 1, 0))
                  .reshape(sr, src, C).astype(dtype))
        b_sr = jnp.asarray(params["b_sr"], f32).reshape(1, C)
        gamma = jnp.asarray(params["gamma"], f32).reshape(1, C)
        beta = jnp.asarray(params["beta"], f32).reshape(1, C)

        th = _pick_tile(Ho, max(1, 512 // max(Wo, 1)), row_unit=Wo)
        # Ensure >= 2 grid steps when possible so both v7x TensorCores get work.
        if B * (Ho // th) < 2:
            for d in range(th - 1, 0, -1):
                if Ho % d == 0 and (d * Wo) % 8 == 0:
                    th = d
                    break
        n_kv = Ho // th
        rows = th * Wo

        kv_kernel = functools.partial(_kv_sr_kernel, sr=sr, ln_eps=float(ln_eps))
        k_arr, v_arr = pl.pallas_call(
            kv_kernel,
            out_shape=(jax.ShapeDtypeStruct((B, Lr, C), dtype),
                       jax.ShapeDtypeStruct((B, Lr, C), dtype)),
            grid_spec=pltpu.PrefetchScalarGridSpec(
                num_scalar_prefetch=0,
                grid=(B, n_kv),
                in_specs=[
                    pl.BlockSpec((1, th, sr, Wo, src),
                                 lambda b, t: (b, t, 0, 0, 0)),
                    full((sr, src, C)), full((1, C)),
                    full((1, C)), full((1, C)),
                    full((C, C)), full((1, C)),
                    full((C, C)), full((1, C)),
                ],
                out_specs=(pl.BlockSpec((1, rows, C), lambda b, t: (b, t, 0)),
                           pl.BlockSpec((1, rows, C), lambda b, t: (b, t, 0))),
            ),
            compiler_params=pltpu.CompilerParams(
                dimension_semantics=("parallel", "parallel")),
        )(x_kv, w_sr_k, b_sr, gamma, beta, wk_t, bk, wv_t, bv)
    else:
        Lr = L
        tkv = _pick_tile(L, 1024, row_unit=1)
        if B * (L // tkv) < 2:
            for d in range(tkv - 1, 0, -1):
                if L % d == 0 and d % 8 == 0:
                    tkv = d
                    break
        n_kv = L // tkv
        k_arr, v_arr = pl.pallas_call(
            _kv_plain_kernel,
            out_shape=(jax.ShapeDtypeStruct((B, Lr, C), dtype),
                       jax.ShapeDtypeStruct((B, Lr, C), dtype)),
            grid_spec=pltpu.PrefetchScalarGridSpec(
                num_scalar_prefetch=0,
                grid=(B, n_kv),
                in_specs=[
                    pl.BlockSpec((1, tkv, C), lambda b, t: (b, t, 0)),
                    full((C, C)), full((1, C)),
                    full((C, C)), full((1, C)),
                ],
                out_specs=(pl.BlockSpec((1, tkv, C), lambda b, t: (b, t, 0)),
                           pl.BlockSpec((1, tkv, C), lambda b, t: (b, t, 0))),
            ),
            compiler_params=pltpu.CompilerParams(
                dimension_semantics=("parallel", "parallel")),
        )(hidden_states, wk_t, bk, wv_t, bv)

    # ------------- attention, tiled over (batch, query stripes) ---------------
    tq = _pick_tile(L, 512, row_unit=1)      # up to 512-row stripes (v7x-safe)
    nq = L // tq

    attn_kernel = functools.partial(_attention_kernel,
                                    num_heads=num_heads, head_dim=head_dim)
    out = pl.pallas_call(
        attn_kernel,
        out_shape=jax.ShapeDtypeStruct((B, L, C), dtype),
        grid_spec=pltpu.PrefetchScalarGridSpec(
            num_scalar_prefetch=0,
            grid=(B, nq),
            in_specs=[
                pl.BlockSpec((1, tq, C), lambda b, i: (b, i, 0)),
                full((C, C)), full((1, C)),
                pl.BlockSpec((1, Lr, C), lambda b, i: (b, 0, 0)),
                pl.BlockSpec((1, Lr, C), lambda b, i: (b, 0, 0)),
            ],
            out_specs=pl.BlockSpec((1, tq, C), lambda b, i: (b, i, 0)),
            scratch_shapes=[pltpu.VMEM((tq, C), jnp.float32)],
        ),
        compiler_params=pltpu.CompilerParams(
            dimension_semantics=("parallel", "parallel")),
    )(hidden_states, wq_t, bq, k_arr, v_arr)

    return out


# ---------------------------------------------------------------------------
# Pure-JAX reference (mirrors the torch forward, eval mode, f32)
# ---------------------------------------------------------------------------
def reference_attention(hidden_states, height, width, params, num_heads,
                        sr_ratio, ln_eps=1e-5):
    B, L, C = hidden_states.shape
    dh = C // num_heads
    hp = lax.Precision.HIGHEST

    def linear(x, w, b):
        return jnp.einsum("blc,oc->blo", x, w, precision=hp) + b

    q = linear(hidden_states, params["wq"], params["bq"])
    q = q.reshape(B, L, num_heads, dh).transpose(0, 2, 1, 3) / math.sqrt(dh)

    if sr_ratio > 1:
        x = hidden_states.transpose(0, 2, 1).reshape(B, C, height, width)
        y = lax.conv_general_dilated(
            x, params["w_sr"], (sr_ratio, sr_ratio), "VALID",
            dimension_numbers=("NCHW", "OIHW", "NCHW"), precision=hp)
        y = y + params["b_sr"].reshape(1, C, 1, 1)
        hs = y.reshape(B, C, -1).transpose(0, 2, 1)
        mean = hs.mean(-1, keepdims=True)
        var = ((hs - mean) ** 2).mean(-1, keepdims=True)
        hs = (hs - mean) / jnp.sqrt(var + ln_eps) * params["gamma"] + params["beta"]
    else:
        hs = hidden_states

    Lr = hs.shape[1]
    k = linear(hs, params["wk"], params["bk"]).reshape(
        B, Lr, num_heads, dh).transpose(0, 2, 1, 3)
    v = linear(hs, params["wv"], params["bv"]).reshape(
        B, Lr, num_heads, dh).transpose(0, 2, 1, 3)

    s = jnp.einsum("bhld,bhmd->bhlm", q, k, precision=hp)
    p = jax.nn.softmax(s, axis=-1)
    ctx = jnp.einsum("bhlm,bhmd->bhld", p, v, precision=hp)
    return ctx.transpose(0, 2, 1, 3).reshape(B, L, C)


if __name__ == "__main__":
    # Small Segformer-stage-like config: hidden=64, 2 heads, 16x16 tokens, sr=2.
    B = 2
    hidden_size = 64
    num_heads = 2
    sr_ratio = 2
    H = W = 16
    L = H * W
    C = hidden_size

    key = jax.random.PRNGKey(0)
    keys = jax.random.split(key, 11)
    hidden_states = jax.random.normal(keys[0], (B, L, C), dtype=jnp.float32)
    params = {
        "wq": jax.random.normal(keys[1], (C, C), jnp.float32) * 0.05,
        "bq": jax.random.normal(keys[2], (C,), jnp.float32) * 0.02,
        "wk": jax.random.normal(keys[3], (C, C), jnp.float32) * 0.05,
        "bk": jax.random.normal(keys[4], (C,), jnp.float32) * 0.02,
        "wv": jax.random.normal(keys[5], (C, C), jnp.float32) * 0.05,
        "bv": jax.random.normal(keys[6], (C,), jnp.float32) * 0.02,
        "w_sr": jax.random.normal(keys[7], (C, C, sr_ratio, sr_ratio),
                                  jnp.float32) * 0.05,
        "b_sr": jax.random.normal(keys[8], (C,), jnp.float32) * 0.02,
        "gamma": 1.0 + 0.1 * jax.random.normal(keys[9], (C,), jnp.float32),
        "beta": 0.1 * jax.random.normal(keys[10], (C,), jnp.float32),
    }

    # sr_ratio > 1 path (in-kernel sr-conv + LN fused with K/V projections).
    out = segformer_efficient_self_attention(hidden_states, H, W, params,
                                             num_heads, sr_ratio)
    out = jax.block_until_ready(out)
    ref = reference_attention(hidden_states, H, W, params, num_heads, sr_ratio)
    assert out.shape == (B, L, C)
    assert jnp.allclose(out, ref, atol=1e-2, rtol=1e-2), (
        f"sr>1 mismatch: max abs err {float(jnp.max(jnp.abs(out - ref)))}")

    # sr_ratio == 1 path (no sequence reduction).
    out1 = segformer_efficient_self_attention(hidden_states, H, W, params,
                                              num_heads, 1)
    out1 = jax.block_until_ready(out1)
    ref1 = reference_attention(hidden_states, H, W, params, num_heads, 1)
    assert jnp.allclose(out1, ref1, atol=1e-2, rtol=1e-2), (
        f"sr=1 mismatch: max abs err {float(jnp.max(jnp.abs(out1 - ref1)))}")

    # bf16 path: exercises native-dtype MXU operands and bf16 K/V storage.
    hs_bf16 = hidden_states.astype(jnp.bfloat16)
    out_bf = segformer_efficient_self_attention(hs_bf16, H, W, params,
                                                num_heads, sr_ratio)
    out_bf = jax.block_until_ready(out_bf)
    ref_bf = reference_attention(hs_bf16.astype(jnp.float32), H, W, params,
                                 num_heads, sr_ratio)
    err_bf = float(jnp.max(jnp.abs(out_bf.astype(jnp.float32) - ref_bf)))
    assert out_bf.dtype == jnp.bfloat16 and err_bf < 0.1, (
        f"bf16 mismatch: max abs err {err_bf}")

    print("KERNEL_OK")
</pallas_src>

<mosaic_0001>
module attributes {stable_mosaic.version = 11 : i64} {
  func.func @_kv_sr_kernel(%arg0: i32, %arg1: i32, %arg2: memref<1x8x2x8x128xf32, #tpu.memory_space<vmem>>, %arg3: memref<2x128x64xf32, #tpu.memory_space<vmem>>, %arg4: memref<1x64xf32, #tpu.memory_space<vmem>>, %arg5: memref<1x64xf32, #tpu.memory_space<vmem>>, %arg6: memref<1x64xf32, #tpu.memory_space<vmem>>, %arg7: memref<64x64xf32, #tpu.memory_space<vmem>>, %arg8: memref<1x64xf32, #tpu.memory_space<vmem>>, %arg9: memref<64x64xf32, #tpu.memory_space<vmem>>, %arg10: memref<1x64xf32, #tpu.memory_space<vmem>>, %arg11: memref<1x64x64xf32, #tpu.memory_space<vmem>>, %arg12: memref<1x64x64xf32, #tpu.memory_space<vmem>>) attributes {dimension_semantics = [#tpu.dimension_semantics<parallel>, #tpu.dimension_semantics<parallel>], iteration_bounds = array<i64: 2, 1>, scalar_prefetch = 0 : i64, scratch_operands = 0 : i64, tpu.core_type = #tpu.core_type<tc>, window_params = [{transform_indices = @transform_0, window_bounds = array<i64: 1, 8, 2, 8, 128>}, {pipeline_mode = #tpu.pipeline_mode<synchronous>, transform_indices = @transform_1, window_bounds = array<i64: 2, 128, 64>}, {pipeline_mode = #tpu.pipeline_mode<synchronous>, transform_indices = @transform_2, window_bounds = array<i64: 1, 64>}, {pipeline_mode = #tpu.pipeline_mode<synchronous>, transform_indices = @transform_3, window_bounds = array<i64: 1, 64>}, {pipeline_mode = #tpu.pipeline_mode<synchronous>, transform_indices = @transform_4, window_bounds = array<i64: 1, 64>}, {pipeline_mode = #tpu.pipeline_mode<synchronous>, transform_indices = @transform_5, window_bounds = array<i64: 64, 64>}, {pipeline_mode = #tpu.pipeline_mode<synchronous>, transform_indices = @transform_6, window_bounds = array<i64: 1, 64>}, {pipeline_mode = #tpu.pipeline_mode<synchronous>, transform_indices = @transform_7, window_bounds = array<i64: 64, 64>}, {pipeline_mode = #tpu.pipeline_mode<synchronous>, transform_indices = @transform_8, window_bounds = array<i64: 1, 64>}, {transform_indices = @transform_9, window_bounds = array<i64: 1, 64, 64>}, {transform_indices = @transform_10, window_bounds = array<i64: 1, 64, 64>}]} {
    %cst = arith.constant 0.000000e+00 : f32
    %0 = vector.broadcast %cst : f32 to vector<64x64xf32>
    %c0 = arith.constant 0 : index
    %c0_0 = arith.constant 0 : index
    %c0_1 = arith.constant 0 : index
    %c0_2 = arith.constant 0 : index
    %c0_3 = arith.constant 0 : index
    %1 = vector.load %arg2[%c0, %c0_0, %c0_1, %c0_2, %c0_3] : memref<1x8x2x8x128xf32, #tpu.memory_space<vmem>>, vector<1x8x1x8x128xf32>
    %2 = vector.shape_cast %1 : vector<1x8x1x8x128xf32> to vector<8x8x128xf32>
    %3 = vector.shape_cast %2 : vector<8x8x128xf32> to vector<64x128xf32>
    %c0_4 = arith.constant 0 : index
    %c0_5 = arith.constant 0 : index
    %c0_6 = arith.constant 0 : index
    %4 = vector.load %arg3[%c0_4, %c0_5, %c0_6] : memref<2x128x64xf32, #tpu.memory_space<vmem>>, vector<1x128x64xf32>
    %5 = vector.shape_cast %4 : vector<1x128x64xf32> to vector<128x64xf32>
    %cst_7 = arith.constant dense<0.000000e+00> : vector<64x64xf32>
    %6 = tpu.matmul %3, %5, %cst_7 {dimension_numbers = #tpu.dot_dimension_numbers<[1], [0], [0], [1], [0, 0, 1, 1], [], []>} : vector<64x128xf32>, vector<128x64xf32>, vector<64x64xf32> -> vector<64x64xf32>
    %7 = arith.addf %0, %6 : vector<64x64xf32>
    %c0_8 = arith.constant 0 : index
    %c0_9 = arith.constant 0 : index
    %c1 = arith.constant 1 : index
    %c0_10 = arith.constant 0 : index
    %c0_11 = arith.constant 0 : index
    %8 = vector.load %arg2[%c0_8, %c0_9, %c1, %c0_10, %c0_11] : memref<1x8x2x8x128xf32, #tpu.memory_space<vmem>>, vector<1x8x1x8x128xf32>
    %9 = vector.shape_cast %8 : vector<1x8x1x8x128xf32> to vector<8x8x128xf32>
    %10 = vector.shape_cast %9 : vector<8x8x128xf32> to vector<64x128xf32>
    %c1_12 = arith.constant 1 : index
    %c0_13 = arith.constant 0 : index
    %c0_14 = arith.constant 0 : index
    %11 = vector.load %arg3[%c1_12, %c0_13, %c0_14] : memref<2x128x64xf32, #tpu.memory_space<vmem>>, vector<1x128x64xf32>
    %12 = vector.shape_cast %11 : vector<1x128x64xf32> to vector<128x64xf32>
    %cst_15 = arith.constant dense<0.000000e+00> : vector<64x64xf32>
    %13 = tpu.matmul %10, %12, %cst_15 {dimension_numbers = #tpu.dot_dimension_numbers<[1], [0], [0], [1], [0, 0, 1, 1], [], []>} : vector<64x128xf32>, vector<128x64xf32>, vector<64x64xf32> -> vector<64x64xf32>
    %14 = arith.addf %7, %13 : vector<64x64xf32>
    %c0_16 = arith.constant 0 : index
    %c0_17 = arith.constant 0 : index
    %15 = vector.load %arg4[%c0_16, %c0_17] : memref<1x64xf32, #tpu.memory_space<vmem>>, vector<1x64xf32>
    %16 = vector.broadcast %15 : vector<1x64xf32> to vector<64x64xf32>
    %17 = arith.addf %14, %16 : vector<64x64xf32>
    %cst_18 = arith.constant dense<0.000000e+00> : vector<64xf32>
    %18 = vector.multi_reduction <add>, %17, %cst_18 [1] : vector<64x64xf32> to vector<64xf32>
    %19 = vector.shape_cast %18 : vector<64xf32> to vector<64x1xf32>
    %cst_19 = arith.constant 6.400000e+01 : f32
    %20 = vector.broadcast %cst_19 : f32 to vector<64x1xf32>
    %21 = arith.divf %19, %20 : vector<64x1xf32>
    %22 = vector.broadcast %21 : vector<64x1xf32> to vector<64x64xf32>
    %23 = arith.subf %17, %22 : vector<64x64xf32>
    %24 = arith.mulf %23, %23 : vector<64x64xf32>
    %cst_20 = arith.constant dense<0.000000e+00> : vector<64xf32>
    %25 = vector.multi_reduction <add>, %24, %cst_20 [1] : vector<64x64xf32> to vector<64xf32>
    %26 = vector.shape_cast %25 : vector<64xf32> to vector<64x1xf32>
    %cst_21 = arith.constant 6.400000e+01 : f32
    %27 = vector.broadcast %cst_21 : f32 to vector<64x1xf32>
    %28 = arith.divf %26, %27 : vector<64x1xf32>
    %cst_22 = arith.constant 9.99999974E-6 : f32
    %29 = vector.broadcast %cst_22 : f32 to vector<64x1xf32>
    %30 = arith.addf %28, %29 : vector<64x1xf32>
    %31 = math.rsqrt %30 : vector<64x1xf32>
    %32 = vector.broadcast %31 : vector<64x1xf32> to vector<64x64xf32>
    %33 = arith.mulf %23, %32 : vector<64x64xf32>
    %c0_23 = arith.constant 0 : index
    %c0_24 = arith.constant 0 : index
    %34 = vector.load %arg5[%c0_23, %c0_24] : memref<1x64xf32, #tpu.memory_space<vmem>>, vector<1x64xf32>
    %35 = vector.broadcast %34 : vector<1x64xf32> to vector<64x64xf32>
    %36 = arith.mulf %33, %35 : vector<64x64xf32>
    %c0_25 = arith.constant 0 : index
    %c0_26 = arith.constant 0 : index
    %37 = vector.load %arg6[%c0_25, %c0_26] : memref<1x64xf32, #tpu.memory_space<vmem>>, vector<1x64xf32>
    %38 = vector.broadcast %37 : vector<1x64xf32> to vector<64x64xf32>
    %39 = arith.addf %36, %38 : vector<64x64xf32>
    %c0_27 = arith.constant 0 : index
    %c0_28 = arith.constant 0 : index
    %40 = vector.load %arg7[%c0_27, %c0_28] : memref<64x64xf32, #tpu.memory_space<vmem>>, vector<64x64xf32>
    %cst_29 = arith.constant dense<0.000000e+00> : vector<64x64xf32>
    %41 = tpu.matmul %39, %40, %cst_29 {dimension_numbers = #tpu.dot_dimension_numbers<[1], [0], [0], [1], [0, 0, 1, 1], [], []>} : vector<64x64xf32>, vector<64x64xf32>, vector<64x64xf32> -> vector<64x64xf32>
    %c0_30 = arith.constant 0 : index
    %c0_31 = arith.constant 0 : index
    %42 = vector.load %arg8[%c0_30, %c0_31] : memref<1x64xf32, #tpu.memory_space<vmem>>, vector<1x64xf32>
    %43 = vector.broadcast %42 : vector<1x64xf32> to vector<64x64xf32>
    %44 = arith.addf %41, %43 : vector<64x64xf32>
    %c0_32 = arith.constant 0 : index
    %c0_33 = arith.constant 0 : index
    %45 = vector.load %arg9[%c0_32, %c0_33] : memref<64x64xf32, #tpu.memory_space<vmem>>, vector<64x64xf32>
    %cst_34 = arith.constant dense<0.000000e+00> : vector<64x64xf32>
    %46 = tpu.matmul %39, %45, %cst_34 {dimension_numbers = #tpu.dot_dimension_numbers<[1], [0], [0], [1], [0, 0, 1, 1], [], []>} : vector<64x64xf32>, vector<64x64xf32>, vector<64x64xf32> -> vector<64x64xf32>
    %c0_35 = arith.constant 0 : index
    %c0_36 = arith.constant 0 : index
    %47 = vector.load %arg10[%c0_35, %c0_36] : memref<1x64xf32, #tpu.memory_space<vmem>>, vector<1x64xf32>
    %48 = vector.broadcast %47 : vector<1x64xf32> to vector<64x64xf32>
    %49 = arith.addf %46, %48 : vector<64x64xf32>
    %c0_37 = arith.constant 0 : index
    %c0_38 = arith.constant 0 : index
    %c0_39 = arith.constant 0 : index
    %50 = vector.load %arg11[%c0_37, %c0_38, %c0_39] : memref<1x64x64xf32, #tpu.memory_space<vmem>>, vector<1x64x64xf32>
    %51 = vector.shape_cast %50 : vector<1x64x64xf32> to vector<64x64xf32>
    %52 = vector.shape_cast %44 : vector<64x64xf32> to vector<1x64x64xf32>
    tpu.vector_store %arg11[%c0_37, %c0_38, %c0_39], %52 {strides = array<i32>} : memref<1x64x64xf32, #tpu.memory_space<vmem>>, vector<1x64x64xf32>,
    %c0_40 = arith.constant 0 : index
    %c0_41 = arith.constant 0 : index
    %c0_42 = arith.constant 0 : index
    %53 = vector.load %arg12[%c0_40, %c0_41, %c0_42] : memref<1x64x64xf32, #tpu.memory_space<vmem>>, vector<1x64x64xf32>
    %54 = vector.shape_cast %53 : vector<1x64x64xf32> to vector<64x64xf32>
    %55 = vector.shape_cast %49 : vector<64x64xf32> to vector<1x64x64xf32>
    tpu.vector_store %arg12[%c0_40, %c0_41, %c0_42], %55 {strides = array<i32>} : memref<1x64x64xf32, #tpu.memory_space<vmem>>, vector<1x64x64xf32>,
    return
  }
  func.func @transform_0(%arg0: i32, %arg1: i32) -> (i32, i32, i32, i32, i32) {
    %c0_i32 = arith.constant 0 : i32
    %c0_i32_0 = arith.constant 0 : i32
    %c0_i32_1 = arith.constant 0 : i32
    %c0_i32_2 = arith.constant 0 : i32
    return %arg0, %arg1, %c0_i32, %c0_i32_0, %c0_i32_1 : i32, i32, i32, i32, i32
  }
  func.func @transform_1(%arg0: i32, %arg1: i32) -> (i32, i32, i32) {
    %c0_i32 = arith.constant 0 : i32
    %c0_i32_0 = arith.constant 0 : i32
    %c0_i32_1 = arith.constant 0 : i32
    %c0_i32_2 = arith.constant 0 : i32
    return %c0_i32, %c0_i32_0, %c0_i32_1 : i32, i32, i32
  }
  func.func @transform_2(%arg0: i32, %arg1: i32) -> (i32, i32) {
    %c0_i32 = arith.constant 0 : i32
    %c0_i32_0 = arith.constant 0 : i32
    %c0_i32_1 = arith.constant 0 : i32
    return %c0_i32, %c0_i32_0 : i32, i32
  }
  func.func @transform_3(%arg0: i32, %arg1: i32) -> (i32, i32) {
    %c0_i32 = arith.constant 0 : i32
    %c0_i32_0 = arith.constant 0 : i32
    %c0_i32_1 = arith.constant 0 : i32
    return %c0_i32, %c0_i32_0 : i32, i32
  }
  func.func @transform_4(%arg0: i32, %arg1: i32) -> (i32, i32) {
    %c0_i32 = arith.constant 0 : i32
    %c0_i32_0 = arith.constant 0 : i32
    %c0_i32_1 = arith.constant 0 : i32
    return %c0_i32, %c0_i32_0 : i32, i32
  }
  func.func @transform_5(%arg0: i32, %arg1: i32) -> (i32, i32) {
    %c0_i32 = arith.constant 0 : i32
    %c0_i32_0 = arith.constant 0 : i32
    %c0_i32_1 = arith.constant 0 : i32
    return %c0_i32, %c0_i32_0 : i32, i32
  }
  func.func @transform_6(%arg0: i32, %arg1: i32) -> (i32, i32) {
    %c0_i32 = arith.constant 0 : i32
    %c0_i32_0 = arith.constant 0 : i32
    %c0_i32_1 = arith.constant 0 : i32
    return %c0_i32, %c0_i32_0 : i32, i32
  }
  func.func @transform_7(%arg0: i32, %arg1: i32) -> (i32, i32) {
    %c0_i32 = arith.constant 0 : i32
    %c0_i32_0 = arith.constant 0 : i32
    %c0_i32_1 = arith.constant 0 : i32
    return %c0_i32, %c0_i32_0 : i32, i32
  }
  func.func @transform_8(%arg0: i32, %arg1: i32) -> (i32, i32) {
    %c0_i32 = arith.constant 0 : i32
    %c0_i32_0 = arith.constant 0 : i32
    %c0_i32_1 = arith.constant 0 : i32
    return %c0_i32, %c0_i32_0 : i32, i32
  }
  func.func @transform_9(%arg0: i32, %arg1: i32) -> (i32, i32, i32) {
    %c0_i32 = arith.constant 0 : i32
    %c0_i32_0 = arith.constant 0 : i32
    return %arg0, %arg1, %c0_i32 : i32, i32, i32
  }
  func.func @transform_10(%arg0: i32, %arg1: i32) -> (i32, i32, i32) {
    %c0_i32 = arith.constant 0 : i32
    %c0_i32_0 = arith.constant 0 : i32
    return %arg0, %arg1, %c0_i32 : i32, i32, i32
  }
}

</mosaic_0001>

<bundles_post_ra>
// kernel: tpu_custom_call.1
= control target key start
LH: loop header
LB: loop body
LE: loop exit
PB: predicated region body
PF: predicated region fallthrough
CT: control target
= control target key end

     0   :  { %16 = vsyncpa [#allocation3], 0  ;;  %s2323_s0 = inlined_call_operand.vmem [shape: f32[2,8,2,8,128], index: 0, kind: input, shape index: {}]   ;;  %s2324_s1 = inlined_call_operand.vmem [shape: f32[2,128,64], index: 1, kind: input, shape index: {}]   ;;  %s2325_s2 = inlined_call_operand.vmem [shape: f32[1,64], index: 2, kind: input, shape index: {}]   ;;  %s2326_s3 = inlined_call_operand.vmem [shape: f32[1,64], index: 3, kind: input, shape index: {}]   ;;  %s2327_s4 = inlined_call_operand.vmem [shape: f32[1,64], index: 4, kind: input, shape index: {}]   ;;  %s2328_s5 = inlined_call_operand.vmem [shape: f32[64,64], index: 5, kind: input, shape index: {}]   ;;  %s2329_s6 = inlined_call_operand.vmem [shape: f32[1,64], index: 6, kind: input, shape index: {}]   ;;  %s2330_s7 = inlined_call_operand.vmem [shape: f32[64,64], index: 7, kind: input, shape index: {}]   ;;  %s2331_s8 = inlined_call_operand.vmem [shape: f32[1,64], index: 8, kind: input, shape index: {}]   ;;  %s2332_s9 = inlined_call_operand.hbm [shape: f32[2,64,64], index: 9, kind: output, shape index: {0}]   ;;  %s2333_s10 = inlined_call_operand.hbm [shape: f32[2,64,64], index: 10, kind: output, shape index: {1}]  }
   0x1   :  { %18 = vsyncpa [#allocation3 + $0x1], 0 }
   0x2   :  { %19 = vsyncpa [#allocation5], 0 }
   0x3   :  { %21 = vsyncpa [#allocation5 + $0x1], 0  ;;  %s1895_s13 = smov 0   ;;  %s1897_s14 = smov 0  }
   0x4   :  { %s1899_s15 = smov 0   ;;  %s1901_s16 = smov 0  }
   0x5   :  { %s1903_s17 = smov 0   ;;  %s1905_s18 = smov 0  }
   0x6 LB: > { %s1253_s19 = sadd.s32 4294967295, %s1834_s18   ;;  %s1254_s20 = sadd.s32 4294967294, %s1834_s18   ;;  %s1834_s18 = sphi %s1905_s18, %s27_s18   ;;  %s1830_s17 = sphi %s1903_s17, %s2351_s17   ;;  %s1826_s16 = sphi %s1901_s16, %s2350_s16   ;;  %s1822_s15 = sphi %s1899_s15, %s2349_s15   ;;  %s1818_s14 = sphi %s1897_s14, %s2348_s14   ;;  %s1814_s13 = sphi %s1895_s13, %s2347_s13  }
   0x7   : > { %s39_s21 = sadd.s32 1, %s1830_s17  ;;  %s244_s22 = sadd.s32 1, %s1822_s15 }
   0x8   : > { %p41_p0 = scmp.ge.s32.totalorder %s39_s21, 2  ;;  %p254_p1 = scmp.ne.s32.totalorder %s1822_s15, %s1818_s14 }
   0x9   : > { %p255_p2 = scmp.eq.s32.totalorder %s1253_s19, 1  ;;  %p260_p3 = scmp.ne.s32.totalorder %s1818_s14, %s1814_s13 }
   0xa   : > { %s2353_s21 = smov (%p41_p0, %s39_s21), 0  ;;  %p261_p5 = scmp.eq.s32.totalorder %s1254_s20, 1 }
   0xb   : > { %2338 = sst [smem:[#allocation8_spill]] %s2353_s21  ;;  %p1935_p4 = por %p255_p2, %p254_p1 }
   0xc   : > { %s239_s24 = ssub.s32 %s1830_s17, %s2353_s21  ;;  %p1257_p6 = scmp.ge.s32.totalorder %s1834_s18, 1 }
   0xd   : > { %p242_p7 = scmp.eq.s32.totalorder %s239_s24, 0  ;;  %p1942_p8 = por %p261_p5, %p260_p3 }
   0xe   : > { %p345_p9 = scmp.lt.s32.totalorder %s1834_s18, 3 }
   0xf   : > { %s1948_s26 = scalar_select %p242_p7, %s1822_s15, %s244_s22  }
  0x10   : > { %p346_p10 = pnand %p1257_p6, %p345_p9 }
  0x11   : > { %v1270_v0 = vld [vmem:[%s2324_s1 + $0x80] sm:$0xff] (!%p346_p10)  ;;  %v1271_v1 = vld [vmem:[%s2324_s1 + $0x88] sm:$0xff] (!%p346_p10)  ;;  %v1272_v2 = vld [vmem:[%s2324_s1 + $0x90] sm:$0xff] (!%p346_p10)  ;;  %p394_p11 = scmp.lt.s32.totalorder (!%p346_p10), %s1826_s16, 1  ;;  %vm681_vm0 = vcmask (!%p346_p10), 523264   ;;  %s2335_s20 = sshll.u32 (!%p346_p10), %s1826_s16, 10 }
  0x12   : > { %349 = sbr.rel (%p346_p10) target bundleno = 885 (0x375), region = 56  ;;  %v1542_v3 = vpack.c.bf16 (!%p346_p10), %v1271_v1, %v1270_v0  ;;  %v1273_v4 = vld [vmem:[%s2324_s1 + $0x98] sm:$0xff] (!%p346_p10)  ;;  %v1274_v6 = vld [vmem:[%s2324_s1 + $0xa0] sm:$0xff] (!%p346_p10)  ;;  %v1275_v7 = vld [vmem:[%s2324_s1 + $0xa8] sm:$0xff] (!%p346_p10)  ;;  %s2219_s27 = scalar_lea.hbm (!%p346_p10), %s2332_s9, %s2335_s20 }
  0x13   : > { %v1546_v5 = vpack.c.bf16 (!%p346_p10), %v1273_v4, %v1272_v2  ;;  %v1550_v8 = vpack.c.bf16 (!%p346_p10), %v1275_v7, %v1274_v6  ;;  %v1276_v9 = vld [vmem:[%s2324_s1 + $0xb0] sm:$0xff] (!%p346_p10)  ;;  %v1277_v10 = vld [vmem:[%s2324_s1 + $0xb8] sm:$0xff] (!%p346_p10)  ;;  %v1278_v13 = vld [vmem:[%s2324_s1 + $0xc0] sm:$0xff] (!%p346_p10) }
  0x14   : > { %1543 = vmatprep.subr.bf16.mxu0 (!%p346_p10), %v1542_v3  ;;  %v1554_v12 = vpack.c.bf16 (!%p346_p10), %v1277_v10, %v1276_v9  ;;  %v1279_v14 = vld [vmem:[%s2324_s1 + $0xc8] sm:$0xff] (!%p346_p10)  ;;  %v1280_v16 = vld [vmem:[%s2324_s1 + $0xd0] sm:$0xff] (!%p346_p10)  ;;  %v1281_v17 = vld [vmem:[%s2324_s1 + $0xd8] sm:$0xff] (!%p346_p10) }
  0x15   : > { %1545 = vmatpush3.bf16.msra.mxu0 (!%p346_p10), %v1542_v3  ;;  %v1558_v15 = vpack.c.bf16 (!%p346_p10), %v1279_v14, %v1278_v13  ;;  %v1562_v18 = vpack.c.bf16 (!%p346_p10), %v1281_v17, %v1280_v16  ;;  %v1282_v19 = vld [vmem:[%s2324_s1 + $0xe0] sm:$0xff] (!%p346_p10)  ;;  %v1283_v20 = vld [vmem:[%s2324_s1 + $0xe8] sm:$0xff] (!%p346_p10)  ;;  %v1284_v22 = vld [vmem:[%s2324_s1 + $0xf0] sm:$0xff] (!%p346_p10) }
  0x16   : > { %1547 = vmatprep.subr.bf16.mxu0 (!%p346_p10), %v1546_v5  ;;  %v1566_v21 = vpack.c.bf16 (!%p346_p10), %v1283_v20, %v1282_v19  ;;  %v1285_v23 = vld [vmem:[%s2324_s1 + $0xf8] sm:$0xff] (!%p346_p10)  ;;  %v414_v25 = vld [vmem:[%s2324_s1] sm:$0xff] (!%p346_p10)  ;;  %v415_v26 = vld [vmem:[%s2324_s1 + $0x8] sm:$0xff] (!%p346_p10) }
  0x17   : > { %v1570_v24 = vpack.c.bf16 (!%p346_p10), %v1285_v23, %v1284_v22  ;;  %v1574_v27 = vpack.c.bf16 (!%p346_p10), %v415_v26, %v414_v25  ;;  %v416_v28 = vld [vmem:[%s2324_s1 + $0x10] sm:$0xff] (!%p346_p10)  ;;  %v417_v29 = vld [vmem:[%s2324_s1 + $0x18] sm:$0xff] (!%p346_p10)  ;;  %v418_v33 = vld [vmem:[%s2324_s1 + $0x20] sm:$0xff] (!%p346_p10) }
  0x18   : > { %v1578_v31 = vpack.c.bf16 (!%p346_p10), %v417_v29, %v416_v28  ;;  %v419_v34 = vld [vmem:[%s2324_s1 + $0x28] sm:$0xff] (!%p346_p10)  ;;  %v420_v38 = vld [vmem:[%s2324_s1 + $0x30] sm:$0xff] (!%p346_p10)  ;;  %v421_v39 = vld [vmem:[%s2324_s1 + $0x38] sm:$0xff] (!%p346_p10) }
  0x19   : > { %s395_s29 = scalar_select %p394_p11, %s1826_s16, 1  ;;  %1549 = vmatpush3.bf16.msra.mxu0 %v1546_v5  ;;  %v1582_v36 = vpack.c.bf16 %v419_v34, %v418_v33  ;;  %v1586_v41 = vpack.c.bf16 %v421_v39, %v420_v38  ;;  %v422_v43 = vld [vmem:[%s2324_s1 + $0x40] sm:$0xff]  ;;  %v423_v44 = vld [vmem:[%s2324_s1 + $0x48] sm:$0xff]  ;;  %v424_v48 = vld [vmem:[%s2324_s1 + $0x50] sm:$0xff] }
  0x1a   : > { %1551 = vmatprep.subr.bf16.mxu0 %v1550_v8  ;;  %v1590_v46 = vpack.c.bf16 %v423_v44, %v422_v43  ;;  %v425_v49 = vld [vmem:[%s2324_s1 + $0x58] sm:$0xff]  ;;  %v426_v51 = vld [vmem:[%s2324_s1 + $0x60] sm:$0xff]  ;;  %v427_v52 = vld [vmem:[%s2324_s1 + $0x68] sm:$0xff] }
  0x1b   : > { %s1315_s30 = sshll.u32 %s395_s29, 7  ;;  %v1594_v50 = vpack.c.bf16 %v425_v49, %v424_v48  ;;  %v1598_v53 = vpack.c.bf16 %v427_v52, %v426_v51  ;;  %v428_v54 = vld [vmem:[%s2324_s1 + $0x70] sm:$0xff]  ;;  %v429_v55 = vld [vmem:[%s2324_s1 + $0x78] sm:$0xff]  ;;  %v1286_v0 = vld [vmem:[%s2325_s2] ss:$0 sm:$0xff]  ;;  %s2199_s29 = sand.u32 1, %s1818_s14  }
  0x1c   : > { %s1973_s19 = scalar_lea.vmem %s2323_s0, %s1315_s30  ;;  %v1602_v56 = vpack.c.bf16 %v429_v55, %v428_v54  ;;  %s2336_s30 = sshll.u32 %s2199_s29, 6 }
  0x1d   : > { %v1262_v11 = vld [vmem:[%s1973_s19 + $0x8] sm:$0xff]  ;;  %1553 = vmatpush3.bf16.msra.mxu0 %v1550_v8  ;;  %v1263_v30 = vld [vmem:[%s1973_s19 + $0x18] sm:$0xff]  ;;  %v406_v47 = vld [vmem:[%s1973_s19] sm:$0xff]  ;;  %s385_s12 = scalar_lea.vmem [#allocation2], %s2336_s30 }
  0x1e   : > { %1430 = vmatprep.mubr.f32.mxu0 %v1262_v11  ;;  %1555 = vmatprep.subr.bf16.mxu0 %v1554_v12  ;;  %v1264_v32 = vld [vmem:[%s1973_s19 + $0x28] sm:$0xff]  ;;  %v1265_v35 = vld [vmem:[%s1973_s19 + $0x38] sm:$0xff]  ;;  %v407_v57 = vld [vmem:[%s1973_s19 + $0x10] sm:$0xff]  ;;  %s1118_s22 = sshll.u32 %s385_s12, 4  ;;  %s2221_s22 = int_to_ptr.vmem [resolvable:$true] %s1118_s22 }
  0x1f   : > { %v1266_v37 = vld [vmem:[%s1973_s19 + $0x48] sm:$0xff]  ;;  %v1267_v40 = vld [vmem:[%s1973_s19 + $0x58] sm:$0xff]  ;;  %v408_v58 = vld [vmem:[%s1973_s19 + $0x20] sm:$0xff]  ;;  %s1724_s24 = scalar_lea.vmem %s2221_s22, 1024 }
  0x20   : > { %v1268_v42 = vld [vmem:[%s1973_s19 + $0x68] sm:$0xff]  ;;  %v1269_v45 = vld [vmem:[%s1973_s19 + $0x78] sm:$0xff]  ;;  %v409_v59 = vld [vmem:[%s1973_s19 + $0x30] sm:$0xff]  ;;  %p1725_p12 = scmp.ne.s32.totalorder %s2221_s22, %s1724_s24 }
  0x21   : > { %1557 = vmatpush3.bf16.msra.mxu0 %v1554_v12  ;;  %v410_v60 = vld [vmem:[%s1973_s19 + $0x40] sm:$0xff]  ;;  %v411_v61 = vld [vmem:[%s1973_s19 + $0x50] sm:$0xff] }
  0x22   : > { %1559 = vmatprep.subr.bf16.mxu0 %v1558_v15  ;;  %v412_v62 = vld [vmem:[%s1973_s19 + $0x60] sm:$0xff]  ;;  %v413_v63 = vld [vmem:[%s1973_s19 + $0x70] sm:$0xff]  ;;  %p1726_p13 = pnand %p1725_p12, %p1935_p4  ;;  %s1836_s19 = smov [#allocation2]  }
  0x23   : > { %s1728_s20 = sshll.u32 %s1836_s19, 4  ;;  %s1729_s20 = int_to_ptr.vmem [resolvable:$false] %s1728_s20 }
  0x24   : > { %p1727_p0 = pneg %p1726_p13  ;;  %s1730_s30 = scalar_lea.vmem %s1729_s20, 2048 }
  0x25   : > { %1561 = vmatpush3.bf16.msra.mxu0 %v1558_v15  ;;  %p1731_p1 = scmp.lt.s32.totalorder %s2221_s22, %s1729_s20  ;;  %p1732_p2 = scmp.lt.s32.totalorder %s1730_s30, %s1724_s24 }
  0x26   : > { %1563 = vmatprep.subr.bf16.mxu0 %v1562_v18 }
  0x27   : > { %p1733_p3 = por %p1732_p2, %p1731_p1 }
  0x29   : > { %1565 = vmatpush3.bf16.msra.mxu0 %v1562_v18  ;;  %p1734_p5 = pnand %p1733_p3, %p1727_p0 }
  0x2a   : > { %1567 = vmatprep.subr.bf16.mxu0 %v1566_v21 }
  0x2d   : > { %1569 = vmatpush3.bf16.msra.mxu0 %v1566_v21 }
  0x2e   : > { %1571 = vmatprep.subr.bf16.mxu0 %v1570_v24 }
  0x31   : > { %1573 = vmatpush3.bf16.msra.mxu0 %v1570_v24 }
  0x32   : > { %1575 = vmatprep.subr.bf16.mxu0 %v1574_v27 }
  0x34   : > { %1431 = vmatmul.mubr.f32.vlgmr.msra.gmra.mrb[0].mxu0 %v1263_v30 }
  0x35   : > { %1577 = vmatpush3.bf16.msra.mxu0 %v1574_v27  ;;  %1433 = vmatprep.mubr.f32.mxu0 %v1264_v32 }
  0x36   : > { %1579 = vmatprep.subr.bf16.mxu0 %v1578_v31 }
  0x38   : > { %1434 = vmatmul.mubr.f32.gmra.mrb[2].mxu0 %v1265_v35 }
  0x39   : > { %1581 = vmatpush3.bf16.msra.mxu0 %v1578_v31  ;;  %1436 = vmatprep.mubr.f32.mxu0 %v1266_v37 }
  0x3a   : > { %1583 = vmatprep.subr.bf16.mxu0 %v1582_v36 }
  0x3c   : > { %1437 = vmatmul.mubr.f32.gmra.mrb[4].mxu0 %v1267_v40 }
  0x3d   : > { %1585 = vmatpush3.bf16.msra.mxu0 %v1582_v36  ;;  %1439 = vmatprep.mubr.f32.mxu0 %v1268_v42 }
  0x3e   : > { %1587 = vmatprep.subr.bf16.mxu0 %v1586_v41 }
  0x40   : > { %1440 = vmatmul.mubr.f32.gmra.mrb[6].mxu0 %v1269_v45 }
  0x41   : > { %1589 = vmatpush3.bf16.msra.mxu0 %v1586_v41  ;;  %1474 = vmatprep.mubr.f32.mxu0 %v406_v47 }
  0x42   : > { %1591 = vmatprep.subr.bf16.mxu0 %v1590_v46 }
  0x45   : > { %1593 = vmatpush3.bf16.msra.mxu0 %v1590_v46 }
  0x46   : > { %1595 = vmatprep.subr.bf16.mxu0 %v1594_v50 }
  0x49   : > { %1597 = vmatpush3.bf16.msra.mxu0 %v1594_v50 }
  0x4a   : > { %1599 = vmatprep.subr.bf16.mxu0 %v1598_v53 }
  0x4d   : > { %1601 = vmatpush3.bf16.msra.mxu0 %v1598_v53 }
  0x4e   : > { %1603 = vmatprep.subr.bf16.mxu0 %v1602_v56 }
  0x51   : > { %1605 = vmatpush3.bf16.msra.mxu0 %v1602_v56 }
  0x54   : > { %1475 = vmatmul.mubr.f32.vlgmr.msra.gmra.mrb[0].mxu0 %v407_v57 }
  0x55   : > { %1477 = vmatprep.mubr.f32.mxu0 %v408_v58 }
  0x58   : > { %1478 = vmatmul.mubr.f32.gmra.mrb[2].mxu0 %v409_v59 }
  0x59   : > { %1480 = vmatprep.mubr.f32.mxu0 %v410_v60 }
  0x5c   : > { %1481 = vmatmul.mubr.f32.gmra.mrb[4].mxu0 %v411_v61 }
  0x5d   : > { %1483 = vmatprep.mubr.f32.mxu0 %v412_v62 }
  0x60   : > { %1484 = vmatmul.mubr.f32.gmra.mrb[6].mxu0 %v413_v63 }
 0x127   : > { %v1476_v1 = vpop.f32.mrb[0].mxu0 }
 0x128   : > { %v627_v2 = vpop.f32.mrb[1].mxu0  ;;  %v674_v4 = vadd.f32 %v1476_v1, %v1286_v0  ;;  %v817_v1 = vld [vmem:[%s2328_s5] sm:$0xff] }
 0x129   : > { %v673_v3 = vadd.f32 %v1286_v0, %v627_v2  ;;  %v818_v2 = vld [vmem:[%s2328_s5 + $0x8] sm:$0xff] }
 0x12a   : > { %v685_v11 = vsel %vm681_vm0, %v674_v4, 0.0 }
 0x12b   : > { %v1479_v5 = vpop.f32.mrb[2].mxu0  ;;  %v682_v6 = vsel %vm681_vm0, %v673_v3, 0.0 }
 0x12c   : > { %683 = vadd.xlane.f32.xlu0 %v682_v6  ;;  %v637_v7 = vpop.f32.mrb[3].mxu0  ;;  %v676_v9 = vadd.f32 %v1479_v5, %v1286_v0  ;;  %v820_v5 = vld [vmem:[%s2328_s5 + $0x18] sm:$0xff] }
 0x12d   : > { %v675_v8 = vadd.f32 %v1286_v0, %v637_v7  ;;  %v821_v7 = vld [vmem:[%s2328_s5 + $0x20] sm:$0xff] }
 0x12e   : > { %v691_v17 = vsel %vm681_vm0, %v676_v9, 0.0 }
 0x12f   : > { %v1482_v10 = vpop.f32.mrb[4].mxu0  ;;  %v688_v12 = vsel %vm681_vm0, %v675_v8, 0.0 }
 0x130   : > { %686 = vadd.xlane.f32.xlu0 %v685_v11  ;;  %689 = vadd.xlane.f32.xlu1 %v688_v12  ;;  %v647_v13 = vpop.f32.mrb[5].mxu0  ;;  %v678_v15 = vadd.f32 %v1482_v10, %v1286_v0  ;;  %v823_v10 = vld [vmem:[%s2328_s5 + $0x30] sm:$0xff]  ;;  %v824_v11 = vld [vmem:[%s2328_s5 + $0x38] sm:$0xff] }
 0x131   : > { %v677_v14 = vadd.f32 %v1286_v0, %v647_v13  ;;  %v1618_v12 = vpack.c.bf16 %v824_v11, %v823_v10  ;;  %v961_v13 = vld [vmem:[%s2330_s7] sm:$0xff]  ;;  %v967_v11 = vld [vmem:[%s2330_s7 + $0x30] sm:$0xff] }
 0x132   : > { %v697_v22 = vsel %vm681_vm0, %v678_v15, 0.0 }
 0x133   : > { %v1485_v16 = vpop.f32.mrb[6].mxu0  ;;  %v694_v18 = vsel %vm681_vm0, %v677_v14, 0.0 }
 0x134   : > { %692 = vadd.xlane.f32.xlu1 %v691_v17  ;;  %695 = vadd.xlane.f32.xlu0 %v694_v18  ;;  %v657_v19 = vpop.f32.mrb[7].mxu0  ;;  %v680_v21 = vadd.f32 %v1485_v16, %v1286_v0 }
 0x135   : > { %v679_v20 = vadd.f32 %v1286_v0, %v657_v19 }
 0x136   : > { %v703_v24 = vsel %vm681_vm0, %v680_v21, 0.0 }
 0x137   : > { %v700_v23 = vsel %vm681_vm0, %v679_v20, 0.0 }
 0x138   : > { %698 = vadd.xlane.f32.xlu1 %v697_v22  ;;  %701 = vadd.xlane.f32.xlu0 %v700_v23 }
 0x13c   : > { %704 = vadd.xlane.f32.xlu1 %v703_v24 }
 0x1b9   : > { %v684_v25 = vpop.xlane.xlu0 %683 }
 0x1ba   : > { %v707_v26 = vmul.f32 0.015625, %v684_v25 }
 0x1bc   : > { %v2080_v27 = vsub.f32 %v673_v3, %v707_v26  ;;  %v1606_v3 = vpack.c.bf16 %v818_v2, %v817_v1  ;;  %v965_v2 = vld [vmem:[%s2330_s7 + $0x20] sm:$0xff] }
 0x1bd   : > { %v687_v28 = vpop.xlane.xlu0 %686  ;;  %v690_v29 = vpop.xlane.xlu1 %689 }
 0x1be   : > { %v708_v30 = vmul.f32 0.015625, %v687_v28  ;;  %v709_v31 = vmul.f32 0.015625, %v690_v29  ;;  %v723_v32 = vmul.f32 %v2080_v27, %v2080_v27  ;;  %1607 = vmatprep.subr.bf16.mxu1 %v1606_v3 }
 0x1bf   : > { %1609 = vmatpush3.bf16.msra.mxu1 %v1606_v3  ;;  %v966_v3 = vld [vmem:[%s2330_s7 + $0x28] sm:$0xff] }
 0x1c0   : > { %v2084_v33 = vsub.f32 %v674_v4, %v708_v30  ;;  %v2086_v34 = vsub.f32 %v675_v8, %v709_v31  ;;  %v731_v35 = vsel %vm681_vm0, %v723_v32, 0.0  ;;  %v819_v4 = vld [vmem:[%s2328_s5 + $0x10] sm:$0xff]  ;;  %v822_v8 = vld [vmem:[%s2328_s5 + $0x28] sm:$0xff] }
 0x1c1   : > { %v693_v36 = vpop.xlane.xlu1 %692  ;;  %v696_v37 = vpop.xlane.xlu0 %695  ;;  %732 = vadd.xlane.f32.xlu0 %v731_v35  ;;  %v1610_v6 = vpack.c.bf16 %v820_v5, %v819_v4 }
 0x1c2   : > { %v710_v38 = vmul.f32 0.015625, %v693_v36  ;;  %v711_v39 = vmul.f32 0.015625, %v696_v37  ;;  %v724_v40 = vmul.f32 %v2084_v33, %v2084_v33  ;;  %v725_v41 = vmul.f32 %v2086_v34, %v2086_v34 }
 0x1c3   : > { %1611 = vmatprep.subr.bf16.mxu1 %v1610_v6 }
 0x1c4   : > { %v2093_v42 = vsub.f32 %v676_v9, %v710_v38  ;;  %v2095_v43 = vsub.f32 %v677_v14, %v711_v39  ;;  %v734_v44 = vsel %vm681_vm0, %v724_v40, 0.0  ;;  %v737_v45 = vsel %vm681_vm0, %v725_v41, 0.0  ;;  %1613 = vmatpush3.bf16.msra.mxu1 %v1610_v6  ;;  %v962_v14 = vld [vmem:[%s2330_s7 + $0x8] sm:$0xff]  ;;  %v1287_v41 = vld [vmem:[%s2326_s3] ss:$0 sm:$0xff] }
 0x1c5   : > { %v699_v46 = vpop.xlane.xlu1 %698  ;;  %735 = vadd.xlane.f32.xlu1 %v734_v44  ;;  %738 = vadd.xlane.f32.xlu0 %v737_v45  ;;  %v702_v47 = vpop.xlane.xlu0 %701  ;;  %v1614_v9 = vpack.c.bf16 %v822_v8, %v821_v7 }
 0x1c6   : > { %v712_v48 = vmul.f32 0.015625, %v699_v46  ;;  %v713_v49 = vmul.f32 0.015625, %v702_v47  ;;  %v726_v50 = vmul.f32 %v2093_v42, %v2093_v42  ;;  %v727_v51 = vmul.f32 %v2095_v43, %v2095_v43  ;;  %v1288_v47 = vld [vmem:[%s2327_s4] ss:$0 sm:$0xff] }
 0x1c7   : > { %1615 = vmatprep.subr.bf16.mxu1 %v1614_v9 }
 0x1c8   : > { %v2103_v52 = vsub.f32 %v678_v15, %v712_v48  ;;  %v2105_v53 = vsub.f32 %v679_v20, %v713_v49  ;;  %v740_v54 = vsel %vm681_vm0, %v726_v50, 0.0  ;;  %v743_v55 = vsel %vm681_vm0, %v727_v51, 0.0  ;;  %1617 = vmatpush3.bf16.msra.mxu1 %v1614_v9 }
 0x1c9   : > { %741 = vadd.xlane.f32.xlu1 %v740_v54  ;;  %v705_v56 = vpop.xlane.xlu1 %704  ;;  %744 = vadd.xlane.f32.xlu0 %v743_v55  ;;  %v1622_v15 = vpack.c.bf16 %v962_v14, %v961_v13 }
 0x1ca   : > { %v714_v57 = vmul.f32 0.015625, %v705_v56  ;;  %v728_v58 = vmul.f32 %v2103_v52, %v2103_v52  ;;  %v729_v59 = vmul.f32 %v2105_v53, %v2105_v53  ;;  %1619 = vmatprep.subr.bf16.mxu1 %v1618_v12 }
 0x1cc   : > { %v2113_v60 = vsub.f32 %v680_v21, %v714_v57  ;;  %v746_v61 = vsel %vm681_vm0, %v728_v58, 0.0  ;;  %v749_v62 = vsel %vm681_vm0, %v729_v59, 0.0  ;;  %1621 = vmatpush3.bf16.msra.mxu1 %v1618_v12  ;;  %v964_v57 = vld [vmem:[%s2330_s7 + $0x18] sm:$0xff] }
 0x1cd   : > { %747 = vadd.xlane.f32.xlu1 %v746_v61  ;;  %750 = vadd.xlane.f32.xlu0 %v749_v62  ;;  %v968_v12 = vld [vmem:[%s2330_s7 + $0x38] sm:$0xff] }
 0x1ce   : > { %v730_v63 = vmul.f32 %v2113_v60, %v2113_v60  ;;  %1623 = vmatprep.subr.bf16.mxu1 %v1622_v15 }
 0x1d0   : > { %v752_v0 = vsel %vm681_vm0, %v730_v63, 0.0 }
 0x1d1   : > { %753 = vadd.xlane.f32.xlu1 %v752_v0 }
 0x24e   : > { %v733_v16 = vpop.xlane.xlu0 %732 }
 0x24f   : > { %v755_v17 = vmul.f32 0.015625, %v733_v16  ;;  %v1634_v16 = vpack.c.bf16 %v968_v12, %v967_v11 }
 0x251   : > { %v763_v18 = vadd.f32 1e-05, %v755_v17 }
 0x252   : > { %v736_v19 = vpop.xlane.xlu1 %735  ;;  %v739_v20 = vpop.xlane.xlu0 %738 }
 0x253   : > { %1708 = vrsqrt.f32 %v763_v18  ;;  %v756_v21 = vmul.f32 0.015625, %v736_v19  ;;  %v757_v22 = vmul.f32 0.015625, %v739_v20 }
 0x255   : > { %v764_v23 = vadd.f32 1e-05, %v756_v21  ;;  %v765_v24 = vadd.f32 1e-05, %v757_v22 }
 0x256   : > { %v742_v25 = vpop.xlane.xlu1 %741  ;;  %v745_v26 = vpop.xlane.xlu0 %744 }
 0x257   : > { %1710 = vrsqrt.f32 %v764_v23  ;;  %v758_v28 = vmul.f32 0.015625, %v742_v25  ;;  %v759_v29 = vmul.f32 0.015625, %v745_v26 }
 0x258   : > { %1712 = vrsqrt.f32 %v765_v24 }
 0x259   : > { %v766_v30 = vadd.f32 1e-05, %v758_v28  ;;  %v767_v31 = vadd.f32 1e-05, %v759_v29 }
 0x25a   : > { %v748_v32 = vpop.xlane.xlu1 %747  ;;  %v751_v35 = vpop.xlane.xlu0 %750 }
 0x25b   : > { %1714 = vrsqrt.f32 %v766_v30  ;;  %v760_v36 = vmul.f32 0.015625, %v748_v32  ;;  %v761_v37 = vmul.f32 0.015625, %v751_v35 }
 0x25c   : > { %1716 = vrsqrt.f32 %v767_v31 }
 0x25d   : > { %v1709_v38 = vpop.eup %1708  ;;  %v768_v39 = vadd.f32 1e-05, %v760_v36  ;;  %v769_v40 = vadd.f32 1e-05, %v761_v37 }
 0x25e   : > { %v754_v44 = vpop.xlane.xlu1 %753  ;;  %v779_v45 = vmul.f32 %v1709_v38, %v2080_v27  ;;  %v963_v27 = vld [vmem:[%s2330_s7 + $0x10] sm:$0xff] }
 0x25f   : > { %1718 = vrsqrt.f32 %v768_v39  ;;  %v762_v46 = vmul.f32 0.015625, %v754_v44  ;;  %v1626_v0 = vpack.c.bf16 %v964_v57, %v963_v27  ;;  %v1298_v39 = vld [vmem:[%s2331_s8] ss:$0 sm:$0xff] }
 0x260   : > { %1720 = vrsqrt.f32 %v769_v40  ;;  %v794_v48 = vmul.f32 %v1287_v41, %v779_v45 }
 0x261   : > { %v1711_v49 = vpop.eup %1710  ;;  %v770_v50 = vadd.f32 1e-05, %v762_v46 }
 0x262   : > { %v1713_v51 = vpop.eup %1712  ;;  %v809_v54 = vadd.f32 %v1288_v47, %v794_v48  ;;  %v780_v55 = vmul.f32 %v1711_v49, %v2084_v33 }
 0x263   : > { %1722 = vrsqrt.f32 %v770_v50  ;;  %v781_v56 = vmul.f32 %v1713_v51, %v2086_v34 }
 0x264   : > { %1502 = vmatprep.mubr.msk.f32.mxu1 %vm681_vm0, %v809_v54  ;;  %v795_v58 = vmul.f32 %v1287_v41, %v780_v55 }
 0x265   : > { %v1715_v59 = vpop.eup %1714  ;;  %v796_v61 = vmul.f32 %v1287_v41, %v781_v56 }
 0x266   : > { %v1717_v62 = vpop.eup %1716  ;;  %v810_v63 = vadd.f32 %v1288_v47, %v795_v58  ;;  %v782_v33 = vmul.f32 %v1715_v59, %v2093_v42 }
 0x267   : > { %v811_v1 = vadd.f32 %v1288_v47, %v796_v61  ;;  %v783_v34 = vmul.f32 %v1717_v62, %v2095_v43  ;;  %v1630_v43 = vpack.c.bf16 %v966_v3, %v965_v2 }
 0x268   : > { %1503 = vmatmul.mubr.msk.f32.vlgmr.msra.gmra.mrb[0].mxu1 %vm681_vm0, %v810_v63  ;;  %v797_v4 = vmul.f32 %v1287_v41, %v782_v33 }
 0x269   : > { %v1719_v5 = vpop.eup %1718  ;;  %1625 = vmatpush3.bf16.msra.mxu1 %v1622_v15  ;;  %1505 = vmatprep.mubr.msk.f32.mxu1 %vm681_vm0, %v811_v1  ;;  %v798_v6 = vmul.f32 %v1287_v41, %v783_v34 }
 0x26a   : > { %v1721_v42 = vpop.eup %1720  ;;  %1627 = vmatprep.subr.bf16.mxu1 %v1626_v0  ;;  %v812_v7 = vadd.f32 %v1288_v47, %v797_v4  ;;  %v784_v8 = vmul.f32 %v1719_v5, %v2103_v52 }
 0x26b   : > { %v813_v9 = vadd.f32 %v1288_v47, %v798_v6  ;;  %v785_v10 = vmul.f32 %v1721_v42, %v2105_v53 }
 0x26c   : > { %1506 = vmatmul.mubr.msk.f32.gmra.mrb[2].mxu1 %vm681_vm0, %v812_v7  ;;  %v799_v13 = vmul.f32 %v1287_v41, %v784_v8 }
 0x26d   : > { %v1723_v14 = vpop.eup %1722  ;;  %1629 = vmatpush3.bf16.msra.mxu1 %v1626_v0  ;;  %1508 = vmatprep.mubr.msk.f32.mxu1 %vm681_vm0, %v813_v9  ;;  %v800_v15 = vmul.f32 %v1287_v41, %v785_v10 }
 0x26e   : > { %1631 = vmatprep.subr.bf16.mxu1 %v1630_v43  ;;  %v814_v52 = vadd.f32 %v1288_v47, %v799_v13  ;;  %v786_v53 = vmul.f32 %v1723_v14, %v2113_v60  ;;  %v1289_v60 = vld [vmem:[%s2329_s6] ss:$0 sm:$0xff] }
 0x26f   : > { %v815_v17 = vadd.f32 %v1288_v47, %v800_v15 }
 0x270   : > { %1509 = vmatmul.mubr.msk.f32.gmra.mrb[4].mxu1 %vm681_vm0, %v814_v52  ;;  %v801_v18 = vmul.f32 %v1287_v41, %v786_v53 }
 0x271   : > { %1633 = vmatpush3.bf16.msra.mxu1 %v1630_v43  ;;  %1511 = vmatprep.mubr.msk.f32.mxu1 %vm681_vm0, %v815_v17 }
 0x272   : > { %1635 = vmatprep.subr.bf16.mxu1 %v1634_v16  ;;  %v816_v19 = vadd.f32 %v1288_v47, %v801_v18 }
 0x274   : > { %1512 = vmatmul.mubr.msk.f32.gmra.mrb[6].mxu1 %vm681_vm0, %v816_v19 }
 0x275   : > { %1637 = vmatpush3.bf16.msra.mxu1 %v1634_v16  ;;  %1530 = vmatprep.mubr.msk.f32.mxu1 %vm681_vm0, %v809_v54 }
 0x278   : > { %1531 = vmatmul.mubr.msk.f32.vlgmr.msra.gmra.mrb[8].mxu1 %vm681_vm0, %v810_v63 }
 0x279   : > { %1533 = vmatprep.mubr.msk.f32.mxu1 %vm681_vm0, %v811_v1 }
 0x27c   : > { %1534 = vmatmul.mubr.msk.f32.gmra.mrb[10].mxu1 %vm681_vm0, %v812_v7 }
 0x27d   : > { %1536 = vmatprep.mubr.msk.f32.mxu1 %vm681_vm0, %v813_v9 }
 0x280   : > { %1537 = vmatmul.mubr.msk.f32.gmra.mrb[12].mxu1 %vm681_vm0, %v814_v52 }
 0x281   : > { %1539 = vmatprep.mubr.msk.f32.mxu1 %vm681_vm0, %v815_v17 }
 0x284   : > { %1540 = vmatmul.mubr.msk.f32.gmra.mrb[14].mxu1 %vm681_vm0, %v816_v19 }
 0x33b   : > { %v1504_v20 = vpop.f32.mrb[0].mxu1 }
 0x33c   : > { %v928_v21 = vadd.f32 %v1504_v20, %v1289_v60  ;;  %v922_v22 = vpop.f32.mrb[1].mxu1 }
 0x33d   : > { %v923_v23 = vadd.f32 %v1289_v60, %v922_v22 }
 0x33e   : > { %1082 = vst.msk [vmem:[%s385_s12 + $0x8] sm:$0xff] %vm681_vm0, %v928_v21 }
 0x33f   : > { %1081 = vst.msk [vmem:[%s385_s12] sm:$0xff] %vm681_vm0, %v923_v23  ;;  %v1507_v24 = vpop.f32.mrb[2].mxu1 }
 0x340   : > { %v938_v25 = vadd.f32 %v1507_v24, %v1289_v60  ;;  %v932_v26 = vpop.f32.mrb[3].mxu1 }
 0x341   : > { %v933_v28 = vadd.f32 %v1289_v60, %v932_v26 }
 0x342   : > { %1084 = vst.msk [vmem:[%s385_s12 + $0x18] sm:$0xff] %vm681_vm0, %v938_v25 }
 0x343   : > { %1083 = vst.msk [vmem:[%s385_s12 + $0x10] sm:$0xff] %vm681_vm0, %v933_v28  ;;  %v1510_v29 = vpop.f32.mrb[4].mxu1 }
 0x344   : > { %v948_v30 = vadd.f32 %v1510_v29, %v1289_v60  ;;  %v942_v31 = vpop.f32.mrb[5].mxu1 }
 0x345   : > { %v943_v32 = vadd.f32 %v1289_v60, %v942_v31 }
 0x346   : > { %1086 = vst.msk [vmem:[%s385_s12 + $0x28] sm:$0xff] %vm681_vm0, %v948_v30 }
 0x347   : > { %1085 = vst.msk [vmem:[%s385_s12 + $0x20] sm:$0xff] %vm681_vm0, %v943_v32  ;;  %v1513_v35 = vpop.f32.mrb[6].mxu1 }
 0x348   : > { %v958_v36 = vadd.f32 %v1513_v35, %v1289_v60  ;;  %v952_v37 = vpop.f32.mrb[7].mxu1 }
 0x349   : > { %v953_v38 = vadd.f32 %v1289_v60, %v952_v37 }
 0x34a   : > { %1088 = vst.msk [vmem:[%s385_s12 + $0x38] sm:$0xff] %vm681_vm0, %v958_v36 }
 0x34b   : > { %1087 = vst.msk [vmem:[%s385_s12 + $0x30] sm:$0xff] %vm681_vm0, %v953_v38  ;;  %v1532_v40 = vpop.f32.mrb[8].mxu1 }
 0x34c   : > { %v1048_v41 = vadd.f32 %v1532_v40, %v1298_v39  ;;  %v1042_v44 = vpop.f32.mrb[9].mxu1 }
 0x34d   : > { %1737 = shalt.err (!%p1734_p5)
}
 0x34e   : > { %s1738_s12 = scalar_lea.hbm %s2219_s27, 1024  ;;  %s1742_s19 = scalar_lea.hbm %s2332_s9, 2048 }
 0x34f   : > { %p1739_p6 = scmp.ne.s32.totalorder %s2219_s27, %s1738_s12  ;;  %p1743_p10 = scmp.lt.u32.totalorder %s2219_s27, %s2332_s9 }
 0x350   : > { %p1744_p11 = scmp.lt.u32.totalorder %s1742_s19, %s1738_s12  ;;  %p1746_p13 = scmp.lt.u32.totalorder %s1738_s12, %s2219_s27 }
 0x351   : > { %p1740_p7 = pnand %p1739_p6, %p1935_p4 }
 0x352   : > { %p1745_p12 = por %p1744_p11, %p1743_p10 }
 0x353   : > { %p1741_p9 = pneg %p1740_p7 }
 0x354   : > { %p1747_p0 = por %p1746_p13, %p1745_p12 }
 0x356   : > { %p1748_p1 = pnand %p1747_p0, %p1741_p9 }
 0x358   : > { %1751 = shalt.err (!%p1748_p1)
}
 0x359   : > { %s2337_s30 = smov 128   ;;  %s1838_s24 = smov 8   ;;  %v1043_v45 = vadd.f32 %v1298_v39, %v1042_v44  ;;  %v1535_v46 = vpop.f32.mrb[10].mxu1 }
 0x35a   : > { %s2341_s28 = scalar_lea.sflag [#allocation3], %s2199_s29  ;;  %s2342_s11 = sshll.u32 %s2199_s29, 6  ;;  %v1058_v47 = vadd.f32 %v1535_v46, %v1298_v39  ;;  %v1052_v48 = vpop.f32.mrb[11].mxu1 }
 0x35b   : > { %1646 = dma.vmem_to_hbm [thread:$0]  (%p1935_p4), %s2221_s22, 1024, %s2219_s27, %s2341_s28, %s2337_s30, %s2337_s30, %s1838_s24   ;;  %v1053_v49 = vadd.f32 %v1298_v39, %v1052_v48  ;;  %v1538_v50 = vpop.f32.mrb[12].mxu1 }
 0x35c   : > { %s392_s21 = scalar_lea.vmem [#allocation4], %s2342_s11  ;;  %v1068_v51 = vadd.f32 %v1538_v50, %v1298_v39  ;;  %v1062_v54 = vpop.f32.mrb[13].mxu1  ;;  %s2343_s27 = sshll.u32 %s1826_s16, 10 }
 0x35d   : > { %1090 = vst.msk [vmem:[%s392_s21 + $0x8] sm:$0xff] %vm681_vm0, %v1048_v41  ;;  %1089 = vst.msk [vmem:[%s392_s21] sm:$0xff] %vm681_vm0, %v1043_v45  ;;  %v1063_v55 = vadd.f32 %v1298_v39, %v1062_v54  ;;  %s1136_s22 = sshll.u32 %s392_s21, 4  ;;  %v1541_v56 = vpop.f32.mrb[14].mxu1  ;;  %s2268_s20 = scalar_lea.hbm %s2333_s10, %s2343_s27  ;;  %s2270_s22 = int_to_ptr.vmem [resolvable:$true] %s1136_s22 }
 0x35e   : > { %1092 = vst.msk [vmem:[%s392_s21 + $0x18] sm:$0xff] %vm681_vm0, %v1058_v47  ;;  %1091 = vst.msk [vmem:[%s392_s21 + $0x10] sm:$0xff] %vm681_vm0, %v1053_v49  ;;  %v1078_v27 = vadd.f32 %v1541_v56, %v1298_v39  ;;  %v1072_v57 = vpop.f32.mrb[15].mxu1  ;;  %s1752_s11 = scalar_lea.vmem %s2270_s22, 1024  ;;  %s1839_s16 = smov [#allocation4]  }
 0x35f   : > { %1094 = vst.msk [vmem:[%s392_s21 + $0x28] sm:$0xff] %vm681_vm0, %v1068_v51  ;;  %1093 = vst.msk [vmem:[%s392_s21 + $0x20] sm:$0xff] %vm681_vm0, %v1063_v55  ;;  %v1073_v58 = vadd.f32 %v1298_v39, %v1072_v57  ;;  %p1753_p2 = scmp.ne.s32.totalorder %s2270_s22, %s1752_s11  ;;  %s1756_s30 = sshll.u32 %s1839_s16, 4  ;;  %s1757_s30 = int_to_ptr.vmem [resolvable:$false] %s1756_s30 }
 0x360   : > { %1096 = vst.msk [vmem:[%s392_s21 + $0x38] sm:$0xff] %vm681_vm0, %v1078_v27  ;;  %s1758_s27 = scalar_lea.vmem %s1757_s30, 2048  ;;  %p1759_p6 = scmp.lt.s32.totalorder %s2270_s22, %s1757_s30 }
 0x361   : > { %1095 = vst.msk [vmem:[%s392_s21 + $0x30] sm:$0xff] %vm681_vm0, %v1073_v58  ;;  %p1754_p3 = pnand %p1753_p2, %p1935_p4  ;;  %p1760_p7 = scmp.lt.s32.totalorder %s1758_s27, %s1752_s11 }
 0x363   : > { %p1755_p5 = pneg %p1754_p3  ;;  %p1761_p9 = por %p1760_p7, %p1759_p6 }
 0x365   : > { %p1762_p10 = pnand %p1761_p9, %p1755_p5 }
 0x367   : > { %1765 = shalt.err (!%p1762_p10)
}
 0x368   : > { %s1766_s21 = scalar_lea.hbm %s2268_s20, 1024  ;;  %s1770_s16 = scalar_lea.hbm %s2333_s10, 2048 }
 0x369   : > { %p1767_p11 = scmp.ne.s32.totalorder %s2268_s20, %s1766_s21  ;;  %p1771_p0 = scmp.lt.u32.totalorder %s2268_s20, %s2333_s10 }
 0x36a   : > { %p1772_p1 = scmp.lt.u32.totalorder %s1770_s16, %s1766_s21  ;;  %p1774_p3 = scmp.lt.u32.totalorder %s1766_s21, %s2268_s20 }
 0x36b   : > { %p1768_p12 = pnand %p1767_p11, %p1935_p4 }
 0x36c   : > { %p1773_p2 = por %p1772_p1, %p1771_p0 }
 0x36d   : > { %p1769_p13 = pneg %p1768_p12 }
 0x36e   : > { %p1775_p5 = por %p1774_p3, %p1773_p2 }
 0x370   : > { %p1776_p6 = pnand %p1775_p5, %p1769_p13 }
 0x372   : > { %1779 = shalt.err (!%p1776_p6)
}
 0x373   : > { %s2344_s11 = smov 128   ;;  %s2345_s27 = scalar_lea.sflag [#allocation5], %s2199_s29 }
 0x374   : > { %1647 = dma.vmem_to_hbm [thread:$0]  (%p1935_p4), %s2270_s22, 1024, %s2268_s20, %s2345_s27, %s2344_s11, %s2344_s11, %s1838_s24  }
 0x375 PF: > { %p1657_p7 = scmp.ge.s32.totalorder %s1834_s18, 2  ;;  %s1151_s28 = sand.u32 1, %s1814_s13  }
 0x376   : > { %s1152_s21 = scalar_lea.sflag [#allocation3], %s1151_s28 }
 0x377   : > { %p1651_p9 = pnand %p1657_p7, %p1942_p8 }
 0x379   : > { %1805 = dma.done.wait (!%p1651_p9), %s1152_s21, 1024  }
 0x37a   : > { %1807 = vsyncadd (!%p1651_p9), %s1152_s21, 4294966272  ;;  %s1161_s23 = scalar_lea.sflag [#allocation5], %s1151_s28 }
 0x37b   : > { %1809 = dma.done.wait (!%p1651_p9), %s1161_s23, 1024  }
 0x37c   : > { %1811 = vsyncadd (!%p1651_p9), %s1161_s23, 4294966272  ;;  %s27_s18 = sadd.s32 1, %s1834_s18   ;;  %s2346_s29 = sld [smem:[#allocation8_spill]] }
 0x37d   : > { %p24_p10 = scmp.ge.s32.totalorder %s27_s18, 4   ;;  %s2347_s13 = smov %s1818_s14 }
 0x37e   : > { %s2348_s14 = smov %s1822_s15  ;;  %s2349_s15 = smov %s1948_s26 }
 0x37f   : > { %s2350_s16 = smov %s1830_s17  ;;  %26 = sbr.rel (!%p24_p10) target bundleno = 6 (0x6), region = 110 }
 0x382   : > { %s2351_s17 = smov %s2346_s29 }
 0x386   :  { %1166 = vsyncpa [#allocation3], 1 }
 0x387   :  { %1168 = vsyncpa [#allocation3 + $0x1], 1 }
 0x388   :  { %1169 = vsyncpa [#allocation5], 1 }
 0x389   :  { %1171 = vsyncpa [#allocation5 + $0x1], 1 }

</bundles_post_ra>
